<compile_context>
chip_gen: v7x
topology: tpu7x:2x2x1
jax: 0.10.0
libtpu: 0.0.40
codegen_flags: <defaults>
</compile_context>

<pallas_src>
import functools

import jax
import jax.numpy as jnp
from jax.experimental import pallas as pl
from jax.experimental.pallas import tpu as pltpu


def _round_up(v, m):
    return ((v + m - 1) // m) * m


def conv2d_block_forward(x, weight, bias, *, stride=1, padding=0,
                         compute_dtype=jnp.bfloat16):
    """ZeroPad2d(padding) -> Conv2d(stride, bias=True) -> ReLU.

    x:      (N, C, H, W)   float32 (NCHW)
    weight: (O, C, KH, KW) float32 (PyTorch OIHW layout)
    bias:   (O,)           float32
    returns (N, O, OH, OW) float32 (NCHW)
    """
    N, C, H, W = x.shape
    O, Cw, KH, KW = weight.shape
    assert Cw == C

    Hp, Wp = H + 2 * padding, W + 2 * padding
    assert Hp >= KH and Wp >= KW
    # Stride-1 "full" output grid via the flat-shift trick; strided subsampling
    # is a cheap wrapper slice (stride==1 is the module's hot path).
    # TODO(synk): for stride>1 this computes ~stride^2 more columns than needed.
    OHs1 = Hp - KH + 1
    OH = (Hp - KH) // stride + 1
    OW = (Wp - KW) // stride + 1

    out_dtype = x.dtype
    o_sub = 8 * (4 // jnp.dtype(out_dtype).itemsize)       # out sublane granule
    c_sub = 8 * (4 // jnp.dtype(compute_dtype).itemsize)   # bf16 sublane granule

    O_PAD = _round_up(O, o_sub)         # sublane axis: 8 (f32) is enough, NOT 128
    C1 = C + 1                          # +1 constant-ones channel carrying bias
    C1P = _round_up(C1, c_sub)          # aligned per-tap channel block in patch
    K_TOT = KH * KW * C1P               # contraction depth of the single GEMM

    ROWS = OHs1 * Wp                    # flattened stride-1 output columns
    MAX_OFF = (KH - 1) * Wp + (KW - 1)  # largest (kh, kw) flat shift (halo)

    # --- spatial (lane) tiling: second parallel grid axis ---------------------
    n128 = _round_up(ROWS, 128) // 128
    blk128 = min(n128, 16)                                  # <= 2048 lanes/block
    if N * ((n128 + blk128 - 1) // blk128) < 2 and n128 >= 2:
        blk128 = (n128 + 1) // 2        # make sure both v7x TensorCores get work
    ROWS_BLK = blk128 * 128
    NB_R = (n128 + blk128 - 1) // blk128
    ROWS_PAD = NB_R * ROWS_BLK
    L_BLK = ROWS_BLK + MAX_OFF          # per-block input window incl. halo
    L_TOT = ROWS_PAD + MAX_OFF

    # ---- wrapper-side prep: pads / flatten / halo windows only ---------------
    xp = jnp.pad(x, ((0, 0), (0, 0), (padding, padding), (padding, padding)))
    x_flat = xp.reshape(N, C, Hp * Wp)
    x_flat = jnp.pad(x_flat, ((0, 0), (0, C1P - C), (0, L_TOT - Hp * Wp)))
    x_flat = x_flat.at[:, C, :].set(1.0)        # ones channel -> bias via GEMM
    x_flat = x_flat.astype(compute_dtype)
    # Overlapping halo windows per row block so in-kernel slices are all static.
    x_blocks = jnp.stack(
        [x_flat[:, :, r * ROWS_BLK:r * ROWS_BLK + L_BLK] for r in range(NB_R)],
        axis=1)                                  # (N, NB_R, C1P, L_BLK)

    # weight -> single GEMM lhs (O_PAD, KH*KW*C1P); bias on the ones-channel col
    w_t = jnp.transpose(weight, (0, 2, 3, 1)).reshape(O, KH * KW, C)
    w_t = jnp.pad(w_t, ((0, O_PAD - O), (0, 0), (0, C1P - C)))
    w_t = w_t.at[:O, 0, C].set(bias)
    w_flat = w_t.reshape(O_PAD, K_TOT).astype(compute_dtype)

    def kernel(x_ref, w_ref, o_ref, patch_ref):
        # x_ref:     (C1P, L_BLK)      bf16  input window for (n, row-block r)
        # w_ref:     (O_PAD, K_TOT)    bf16  fused conv taps (+ bias column)
        # o_ref:     (O_PAD, ROWS_BLK) f32   lane-dense output block
        # patch_ref: (K_TOT, ROWS_BLK) bf16  VMEM scratch: fused im2col patch
        for kh in range(KH):
            for kw in range(KW):
                t = kh * KW + kw
                off = kh * Wp + kw                        # static flat shift
                patch_ref[t * C1P:(t + 1) * C1P, :] = x_ref[:, off:off + ROWS_BLK]
        acc = jnp.dot(w_ref[...], patch_ref[...],
                      preferred_element_type=jnp.float32)
        o_ref[...] = jnp.maximum(acc, 0.0).astype(o_ref.dtype)

    flops = 2 * N * NB_R * O_PAD * K_TOT * ROWS_BLK
    bytes_accessed = (N * NB_R * C1P * L_BLK * 2 + O_PAD * K_TOT * 2
                      + N * O_PAD * ROWS_PAD * 4)

    out = pl.pallas_call(
        kernel,
        out_shape=jax.ShapeDtypeStruct((N, O_PAD, ROWS_PAD), out_dtype),
        grid_spec=pltpu.PrefetchScalarGridSpec(
            num_scalar_prefetch=0,
            grid=(N, NB_R),
            in_specs=[
                pl.BlockSpec((None, None, C1P, L_BLK), lambda n, r: (n, r, 0, 0)),
                pl.BlockSpec((O_PAD, K_TOT), lambda n, r: (0, 0)),
            ],
            out_specs=pl.BlockSpec((None, O_PAD, ROWS_BLK),
                                   lambda n, r: (n, 0, r)),
            scratch_shapes=[pltpu.VMEM((K_TOT, ROWS_BLK), compute_dtype)],
        ),
        compiler_params=pltpu.CompilerParams(
            dimension_semantics=("parallel", "parallel"),
            # The row-block policy keeps per-step residency tiny; 48 MiB leaves
            # headroom under v7x's 64 MiB physical VMEM while letting v5e/v6e
            # pipeline with the larger (<=2048-lane) blocks.
            vmem_limit_bytes=48 * 1024 * 1024,
        ),
        cost_estimate=pl.CostEstimate(
            flops=flops, transcendentals=0, bytes_accessed=bytes_accessed),
    )(x_blocks, w_flat)

    # Already channel-major: just slice off channel/spatial padding and the
    # wrap-around junk columns; no transpose needed.
    y = out[:, :O, :ROWS].reshape(N, O, OHs1, Wp)
    y = y[:, :, ::stride, ::stride][:, :, :OH, :OW]
    return y


if __name__ == "__main__":
    # Conv2dBlock(input_dim=4, output_dim=8, kernel_size=3, stride=1, padding=1,
    #             norm='none', activation='relu', pad_type='zero')
    key = jax.random.PRNGKey(0)
    k_x, k_w, k_b = jax.random.split(key, 3)

    N, C, H, W = 2, 4, 16, 16
    O, KH, KW = 8, 3, 3
    stride, padding = 1, 1

    x = jax.random.normal(k_x, (N, C, H, W), dtype=jnp.float32)
    fan_in = C * KH * KW
    bound = 1.0 / float(fan_in) ** 0.5
    weight = jax.random.uniform(k_w, (O, C, KH, KW), jnp.float32, -bound, bound)
    bias = jax.random.uniform(k_b, (O,), jnp.float32, -bound, bound)

    fwd = jax.jit(functools.partial(conv2d_block_forward,
                                    stride=stride, padding=padding))
    out = fwd(x, weight, bias)
    jax.block_until_ready(out)
    assert out.shape == (N, O, H, W)

    # Reference on bf16-rounded operands (kernel feeds the MXU bf16, accumulates
    # f32; bias rides the GEMM in bf16, well within tolerance).
    x_r = x.astype(jnp.bfloat16).astype(jnp.float32)
    w_r = weight.astype(jnp.bfloat16).astype(jnp.float32)
    ref = jax.lax.conv_general_dilated(
        x_r, w_r, window_strides=(stride, stride),
        padding=[(padding, padding), (padding, padding)],
        dimension_numbers=("NCHW", "OIHW", "NCHW"),
        precision=jax.lax.Precision.HIGHEST,
    ) + bias.reshape(1, O, 1, 1)
    ref = jnp.maximum(ref, 0.0)
    assert jnp.allclose(out, ref, atol=1e-2, rtol=1e-2), \
        float(jnp.max(jnp.abs(out - ref)))

    print("KERNEL_OK")
</pallas_src>

<mosaic_0001>
module attributes {stable_mosaic.version = 11 : i64} {
  func.func @kernel(%arg0: i32, %arg1: i32, %arg2: memref<1x1x16x422xbf16, #tpu.memory_space<vmem>>, %arg3: memref<8x144xbf16, #tpu.memory_space<vmem>>, %arg4: memref<1x8x384xf32, #tpu.memory_space<vmem>>, %arg5: memref<144x384xbf16, #tpu.memory_space<vmem>>) attributes {dimension_semantics = [#tpu.dimension_semantics<parallel>, #tpu.dimension_semantics<parallel>], iteration_bounds = array<i64: 2, 1>, scalar_prefetch = 0 : i64, scratch_operands = 1 : i64, tpu.core_type = #tpu.core_type<tc>, window_params = [{transform_indices = @transform_0, window_bounds = array<i64: 1, 1, 16, 422>}, {pipeline_mode = #tpu.pipeline_mode<synchronous>, transform_indices = @transform_1, window_bounds = array<i64: 8, 144>}, {transform_indices = @transform_2, window_bounds = array<i64: 1, 8, 384>}]} {
    %c0 = arith.constant 0 : index
    %c0_0 = arith.constant 0 : index
    %c0_1 = arith.constant 0 : index
    %c0_2 = arith.constant 0 : index
    %0 = vector.load %arg2[%c0, %c0_0, %c0_1, %c0_2] : memref<1x1x16x422xbf16, #tpu.memory_space<vmem>>, vector<1x1x16x384xbf16>
    %1 = vector.shape_cast %0 : vector<1x1x16x384xbf16> to vector<16x384xbf16>
    %c0_3 = arith.constant 0 : index
    %c0_4 = arith.constant 0 : index
    %2 = vector.load %arg5[%c0_3, %c0_4] : memref<144x384xbf16, #tpu.memory_space<vmem>>, vector<16x384xbf16>
    tpu.vector_store %arg5[%c0_3, %c0_4], %1 {strides = array<i32>} : memref<144x384xbf16, #tpu.memory_space<vmem>>, vector<16x384xbf16>,
    %c0_5 = arith.constant 0 : index
    %c0_6 = arith.constant 0 : index
    %c0_7 = arith.constant 0 : index
    %c1 = arith.constant 1 : index
    %3 = vector.load %arg2[%c0_5, %c0_6, %c0_7, %c1] : memref<1x1x16x422xbf16, #tpu.memory_space<vmem>>, vector<1x1x16x384xbf16>
    %4 = vector.shape_cast %3 : vector<1x1x16x384xbf16> to vector<16x384xbf16>
    %c16 = arith.constant 16 : index
    %c0_8 = arith.constant 0 : index
    %5 = vector.load %arg5[%c16, %c0_8] : memref<144x384xbf16, #tpu.memory_space<vmem>>, vector<16x384xbf16>
    tpu.vector_store %arg5[%c16, %c0_8], %4 {strides = array<i32>} : memref<144x384xbf16, #tpu.memory_space<vmem>>, vector<16x384xbf16>,
    %c0_9 = arith.constant 0 : index
    %c0_10 = arith.constant 0 : index
    %c0_11 = arith.constant 0 : index
    %c2 = arith.constant 2 : index
    %6 = vector.load %arg2[%c0_9, %c0_10, %c0_11, %c2] : memref<1x1x16x422xbf16, #tpu.memory_space<vmem>>, vector<1x1x16x384xbf16>
    %7 = vector.shape_cast %6 : vector<1x1x16x384xbf16> to vector<16x384xbf16>
    %c32 = arith.constant 32 : index
    %c0_12 = arith.constant 0 : index
    %8 = vector.load %arg5[%c32, %c0_12] : memref<144x384xbf16, #tpu.memory_space<vmem>>, vector<16x384xbf16>
    tpu.vector_store %arg5[%c32, %c0_12], %7 {strides = array<i32>} : memref<144x384xbf16, #tpu.memory_space<vmem>>, vector<16x384xbf16>,
    %c0_13 = arith.constant 0 : index
    %c0_14 = arith.constant 0 : index
    %c0_15 = arith.constant 0 : index
    %c18 = arith.constant 18 : index
    %9 = vector.load %arg2[%c0_13, %c0_14, %c0_15, %c18] : memref<1x1x16x422xbf16, #tpu.memory_space<vmem>>, vector<1x1x16x384xbf16>
    %10 = vector.shape_cast %9 : vector<1x1x16x384xbf16> to vector<16x384xbf16>
    %c48 = arith.constant 48 : index
    %c0_16 = arith.constant 0 : index
    %11 = vector.load %arg5[%c48, %c0_16] : memref<144x384xbf16, #tpu.memory_space<vmem>>, vector<16x384xbf16>
    tpu.vector_store %arg5[%c48, %c0_16], %10 {strides = array<i32>} : memref<144x384xbf16, #tpu.memory_space<vmem>>, vector<16x384xbf16>,
    %c0_17 = arith.constant 0 : index
    %c0_18 = arith.constant 0 : index
    %c0_19 = arith.constant 0 : index
    %c19 = arith.constant 19 : index
    %12 = vector.load %arg2[%c0_17, %c0_18, %c0_19, %c19] : memref<1x1x16x422xbf16, #tpu.memory_space<vmem>>, vector<1x1x16x384xbf16>
    %13 = vector.shape_cast %12 : vector<1x1x16x384xbf16> to vector<16x384xbf16>
    %c64 = arith.constant 64 : index
    %c0_20 = arith.constant 0 : index
    %14 = vector.load %arg5[%c64, %c0_20] : memref<144x384xbf16, #tpu.memory_space<vmem>>, vector<16x384xbf16>
    tpu.vector_store %arg5[%c64, %c0_20], %13 {strides = array<i32>} : memref<144x384xbf16, #tpu.memory_space<vmem>>, vector<16x384xbf16>,
    %c0_21 = arith.constant 0 : index
    %c0_22 = arith.constant 0 : index
    %c0_23 = arith.constant 0 : index
    %c20 = arith.constant 20 : index
    %15 = vector.load %arg2[%c0_21, %c0_22, %c0_23, %c20] : memref<1x1x16x422xbf16, #tpu.memory_space<vmem>>, vector<1x1x16x384xbf16>
    %16 = vector.shape_cast %15 : vector<1x1x16x384xbf16> to vector<16x384xbf16>
    %c80 = arith.constant 80 : index
    %c0_24 = arith.constant 0 : index
    %17 = vector.load %arg5[%c80, %c0_24] : memref<144x384xbf16, #tpu.memory_space<vmem>>, vector<16x384xbf16>
    tpu.vector_store %arg5[%c80, %c0_24], %16 {strides = array<i32>} : memref<144x384xbf16, #tpu.memory_space<vmem>>, vector<16x384xbf16>,
    %c0_25 = arith.constant 0 : index
    %c0_26 = arith.constant 0 : index
    %c0_27 = arith.constant 0 : index
    %c36 = arith.constant 36 : index
    %18 = vector.load %arg2[%c0_25, %c0_26, %c0_27, %c36] : memref<1x1x16x422xbf16, #tpu.memory_space<vmem>>, vector<1x1x16x384xbf16>
    %19 = vector.shape_cast %18 : vector<1x1x16x384xbf16> to vector<16x384xbf16>
    %c96 = arith.constant 96 : index
    %c0_28 = arith.constant 0 : index
    %20 = vector.load %arg5[%c96, %c0_28] : memref<144x384xbf16, #tpu.memory_space<vmem>>, vector<16x384xbf16>
    tpu.vector_store %arg5[%c96, %c0_28], %19 {strides = array<i32>} : memref<144x384xbf16, #tpu.memory_space<vmem>>, vector<16x384xbf16>,
    %c0_29 = arith.constant 0 : index
    %c0_30 = arith.constant 0 : index
    %c0_31 = arith.constant 0 : index
    %c37 = arith.constant 37 : index
    %21 = vector.load %arg2[%c0_29, %c0_30, %c0_31, %c37] : memref<1x1x16x422xbf16, #tpu.memory_space<vmem>>, vector<1x1x16x384xbf16>
    %22 = vector.shape_cast %21 : vector<1x1x16x384xbf16> to vector<16x384xbf16>
    %c112 = arith.constant 112 : index
    %c0_32 = arith.constant 0 : index
    %23 = vector.load %arg5[%c112, %c0_32] : memref<144x384xbf16, #tpu.memory_space<vmem>>, vector<16x384xbf16>
    tpu.vector_store %arg5[%c112, %c0_32], %22 {strides = array<i32>} : memref<144x384xbf16, #tpu.memory_space<vmem>>, vector<16x384xbf16>,
    %c0_33 = arith.constant 0 : index
    %c0_34 = arith.constant 0 : index
    %c0_35 = arith.constant 0 : index
    %c38 = arith.constant 38 : index
    %24 = vector.load %arg2[%c0_33, %c0_34, %c0_35, %c38] : memref<1x1x16x422xbf16, #tpu.memory_space<vmem>>, vector<1x1x16x384xbf16>
    %25 = vector.shape_cast %24 : vector<1x1x16x384xbf16> to vector<16x384xbf16>
    %c128 = arith.constant 128 : index
    %c0_36 = arith.constant 0 : index
    %26 = vector.load %arg5[%c128, %c0_36] : memref<144x384xbf16, #tpu.memory_space<vmem>>, vector<16x384xbf16>
    tpu.vector_store %arg5[%c128, %c0_36], %25 {strides = array<i32>} : memref<144x384xbf16, #tpu.memory_space<vmem>>, vector<16x384xbf16>,
    %c0_37 = arith.constant 0 : index
    %c0_38 = arith.constant 0 : index
    %27 = vector.load %arg3[%c0_37, %c0_38] : memref<8x144xbf16, #tpu.memory_space<vmem>>, vector<8x144xbf16>
    %c0_39 = arith.constant 0 : index
    %c0_40 = arith.constant 0 : index
    %28 = vector.load %arg5[%c0_39, %c0_40] : memref<144x384xbf16, #tpu.memory_space<vmem>>, vector<144x384xbf16>
    %cst = arith.constant dense<0.000000e+00> : vector<8x384xf32>
    %29 = tpu.matmul %27, %28, %cst {dimension_numbers = #tpu.dot_dimension_numbers<[1], [0], [0], [1], [0, 0, 1, 1], [], []>} : vector<8x144xbf16>, vector<144x384xbf16>, vector<8x384xf32> -> vector<8x384xf32>
    %cst_41 = arith.constant 0.000000e+00 : f32
    %30 = vector.broadcast %cst_41 : f32 to vector<8x384xf32>
    %31 = arith.maximumf %29, %30 : vector<8x384xf32>
    %c0_42 = arith.constant 0 : index
    %c0_43 = arith.constant 0 : index
    %c0_44 = arith.constant 0 : index
    %32 = vector.load %arg4[%c0_42, %c0_43, %c0_44] : memref<1x8x384xf32, #tpu.memory_space<vmem>>, vector<1x8x384xf32>
    %33 = vector.shape_cast %32 : vector<1x8x384xf32> to vector<8x384xf32>
    %34 = vector.shape_cast %31 : vector<8x384xf32> to vector<1x8x384xf32>
    tpu.vector_store %arg4[%c0_42, %c0_43, %c0_44], %34 {strides = array<i32>} : memref<1x8x384xf32, #tpu.memory_space<vmem>>, vector<1x8x384xf32>,
    return
  }
  func.func @transform_0(%arg0: i32, %arg1: i32) -> (i32, i32, i32, i32) {
    %c0_i32 = arith.constant 0 : i32
    %c0_i32_0 = arith.constant 0 : i32
    %c0_i32_1 = arith.constant 0 : i32
    return %arg0, %arg1, %c0_i32, %c0_i32_0 : i32, i32, i32, i32
  }
  func.func @transform_1(%arg0: i32, %arg1: i32) -> (i32, i32) {
    %c0_i32 = arith.constant 0 : i32
    %c0_i32_0 = arith.constant 0 : i32
    %c0_i32_1 = arith.constant 0 : i32
    return %c0_i32, %c0_i32_0 : i32, i32
  }
  func.func @transform_2(%arg0: i32, %arg1: i32) -> (i32, i32, i32) {
    %c0_i32 = arith.constant 0 : i32
    %c0_i32_0 = arith.constant 0 : i32
    return %arg0, %c0_i32, %arg1 : i32, i32, i32
  }
}

</mosaic_0001>

<bundles_post_ra>
// kernel: conv2d_block_forward.1
= control target key start
LH: loop header
LB: loop body
LE: loop exit
PB: predicated region body
PF: predicated region fallthrough
CT: control target
= control target key end

     0   :  { %s865_s9 = smov 0   ;;  %s867_s10 = smov 0   ;;  %s920_s0 = inlined_call_operand.vmem [shape: bf16[2,1,16,422], index: 0, kind: input, shape index: {}]   ;;  %s921_s1 = inlined_call_operand.vmem [shape: bf16[8,144], index: 1, kind: input, shape index: {}]   ;;  %s922_s2 = inlined_call_operand.vmem [shape: f32[2,8,384], index: 2, kind: output, shape index: {}]  }
   0x1   :  { %s869_s11 = smov 0  }
   0x2 LB: > { %s24_s12 = sadd.s32 1, %s835_s10  ;;  %p728_p0 = scmp.ge.s32.totalorder %s839_s11, 1  ;;  %s839_s11 = sphi %s869_s11, %s12_s11   ;;  %s835_s10 = sphi %s867_s10, %s924_s10   ;;  %s831_s9 = sphi %s865_s9, %s923_s9  }
   0x3   : > { %p26_p1 = scmp.ge.s32.totalorder %s24_s12, 2  ;;  %p132_p2 = scmp.lt.s32.totalorder %s839_s11, 3 }
   0x5   : > { %s926_s12 = smov (%p26_p1, %s24_s12), 0  ;;  %p133_p3 = pnand %p728_p0, %p132_p2 }
   0x6   : > { %p162_p4 = scmp.lt.s32.totalorder (!%p133_p3), %s831_s9, 1  ;;  %v841_v0 = vmov (!%p133_p3), 0   ;;  %s842_s17 = smov (!%p133_p3), 127   ;;  %v894_v6 = vld [vmem:[%s921_s1] sm:$0xff] (!%p133_p3)  ;;  %vm543_vm0 = vcmask (!%p133_p3), 130048   ;;  %vm233_vm1 = vcmask (!%p133_p3), 1039360  }
   0x7   : > { %136 = sbr.rel (%p133_p3) target bundleno = 413 (0x19d), region = 28  ;;  %588 = vmatprep.subr.bf16.mxu1 (!%p133_p3), %v841_v0  ;;  %s843_s18 = smov (!%p133_p3), 126   ;;  %v768_v7 = vcombine.high (!%p133_p3), %v894_v6, %v894_v6  ;;  %vm271_vm2 = vcmask (!%p133_p3), 1031168   ;;  %vm309_vm3 = vcmask (!%p133_p3), 900096   ;;  %vm347_vm4 = vcmask (!%p133_p3), 891904  }
   0x8   : > { %s844_s19 = smov (!%p133_p3), 110   ;;  %s845_s20 = smov (!%p133_p3), 109   ;;  %vm385_vm5 = vcmask (!%p133_p3), 883712   ;;  %vm423_vm6 = vcmask (!%p133_p3), 752640   ;;  %vm461_vm7 = vcmask (!%p133_p3), 744448   ;;  %vm499_vm8 = vcmask (!%p133_p3), 736256  }
   0x9   : > { %s846_s21 = smov (!%p133_p3), 108   ;;  %s847_s22 = smov (!%p133_p3), 92   ;;  %769 = vmatprep.mubr.msk.bf16.mxu0 (!%p133_p3), %vm543_vm0, %v768_v7  ;;  %770 = vmatprep.mubr.msk.bf16.mxu1 (!%p133_p3), %vm543_vm0, %v768_v7  ;;  %v767_v63 = vcombine.low (!%p133_p3), %v894_v6, %v894_v6 }
   0xa   : > { %s848_s23 = smov (!%p133_p3), 91   ;;  %s849_s26 = smov (!%p133_p3), 90  }
   0xe   : > { %s928_s9 = smov (!%p162_p4, %s831_s9), 1 }
   0xf   : > { %s773_s13 = sshll.u32 %s928_s9, 5  ;;  %s774_s27 = smul.u32 24, %s928_s9 }
  0x10   : > { %s170_s16 = scalar_lea.vmem %s920_s0, %s773_s13 }
  0x11   : > { %v808_v1 = vld [vmem:[%s170_s16 + $0x4] ss:$16 sps:$4 sm:$0xff]   ;;  %v810_v2 = vld [vmem:[%s170_s16] ss:$16 sps:$4 sm:$0xff]   ;;  %v811_v3 = vld [vmem:[%s170_s16 + $0x8] ss:$16 sps:$4 sm:$0xff]   ;;  %s179_s30 = scalar_lea.vmem %s922_s2, %s774_s27 }
  0x12   : > { %227 = vrot.lane.b32.xlu0 %v808_v1, %s842_s17  ;;  %547 = vmatprep.subr.bf16.mxu0 %v808_v1  ;;  %v813_v4 = vld [vmem:[%s170_s16 + $0xc] ss:$16 sps:$4 sm:$0xff]   ;;  %v814_v5 = vld [vmem:[%s170_s16 + $0x8] ss:$16 sps:$4 sm:$0xff]  }
  0x13   : > { %225 = vrot.lane.b32.xlu1 %v810_v2, %s842_s17  ;;  %548 = vmatpush1.bf16.msra.mxu0 %v810_v2 }
  0x14   : > { %589 = vmatpush1.bf16.msra.mxu1 %v814_v5 }
  0x15   : > { %590 = vmatprep.subr.bf16.mxu1 %v841_v0 }
  0x16   : > { %229 = vrot.lane.b32.xlu0 %v811_v3, %s842_s17 }
  0x17   : > { %231 = vrot.lane.b32.xlu1 %v813_v4, %s842_s17 }
  0x1a   : > { %265 = vrot.lane.b32.xlu0 %v808_v1, %s843_s18 }
  0x1b   : > { %267 = vrot.lane.b32.xlu1 %v811_v3, %s843_s18 }
  0x1e   : > { %263 = vrot.lane.b32.xlu0 %v810_v2, %s843_s18 }
  0x1f   : > { %269 = vrot.lane.b32.xlu1 %v813_v4, %s843_s18 }
  0x22   : > { %303 = vrot.lane.b32.xlu0 %v808_v1, %s844_s19 }
  0x23   : > { %305 = vrot.lane.b32.xlu1 %v811_v3, %s844_s19 }
  0x26   : > { %301 = vrot.lane.b32.xlu0 %v810_v2, %s844_s19 }
  0x27   : > { %307 = vrot.lane.b32.xlu1 %v813_v4, %s844_s19 }
  0x2a   : > { %341 = vrot.lane.b32.xlu0 %v808_v1, %s845_s20 }
  0x2b   : > { %343 = vrot.lane.b32.xlu1 %v811_v3, %s845_s20 }
  0x2e   : > { %339 = vrot.lane.b32.xlu0 %v810_v2, %s845_s20 }
  0x2f   : > { %345 = vrot.lane.b32.xlu1 %v813_v4, %s845_s20 }
  0x32   : > { %379 = vrot.lane.b32.xlu0 %v808_v1, %s846_s21 }
  0x33   : > { %381 = vrot.lane.b32.xlu1 %v811_v3, %s846_s21 }
  0x36   : > { %377 = vrot.lane.b32.xlu0 %v810_v2, %s846_s21 }
  0x37   : > { %383 = vrot.lane.b32.xlu1 %v813_v4, %s846_s21 }
  0x3a   : > { %417 = vrot.lane.b32.xlu0 %v808_v1, %s847_s22 }
  0x3b   : > { %419 = vrot.lane.b32.xlu1 %v811_v3, %s847_s22 }
  0x3e   : > { %415 = vrot.lane.b32.xlu0 %v810_v2, %s847_s22 }
  0x3f   : > { %421 = vrot.lane.b32.xlu1 %v813_v4, %s847_s22 }
  0x42   : > { %455 = vrot.lane.b32.xlu0 %v808_v1, %s848_s23 }
  0x43   : > { %457 = vrot.lane.b32.xlu1 %v811_v3, %s848_s23 }
  0x46   : > { %453 = vrot.lane.b32.xlu0 %v810_v2, %s848_s23 }
  0x47   : > { %459 = vrot.lane.b32.xlu1 %v813_v4, %s848_s23 }
  0x4a   : > { %493 = vrot.lane.b32.xlu0 %v808_v1, %s849_s26 }
  0x4b   : > { %495 = vrot.lane.b32.xlu1 %v811_v3, %s849_s26 }
  0x4e   : > { %491 = vrot.lane.b32.xlu0 %v810_v2, %s849_s26 }
  0x4f   : > { %497 = vrot.lane.b32.xlu1 %v813_v4, %s849_s26 }
  0x84   : > { %v228_v8 = vpop.permute.xlu0 %227 }
  0x85   : > { %v226_v9 = vpop.permute.xlu1 %225 }
  0x86   : > { %v234_v14 = vsel %vm233_vm1, %v226_v9, %v228_v8 }
  0x88   : > { %v230_v10 = vpop.permute.xlu0 %229 }
  0x89   : > { %v232_v11 = vpop.permute.xlu1 %231  ;;  %v235_v12 = vsel %vm233_vm1, %v228_v8, %v230_v10 }
  0x8a   : > { %549 = vmatprep.subr.bf16.mxu0 %v235_v12  ;;  %v236_v13 = vsel %vm233_vm1, %v230_v10, %v232_v11 }
  0x8b   : > { %591 = vmatpush1.bf16.msra.mxu1 %v236_v13  ;;  %550 = vmatpush1.bf16.msra.mxu0 %v234_v14 }
  0x8c   : > { %v266_v15 = vpop.permute.xlu0 %265  ;;  %592 = vmatprep.subr.bf16.mxu1 %v841_v0 }
  0x8d   : > { %v268_v16 = vpop.permute.xlu1 %267 }
  0x8e   : > { %v273_v17 = vsel %vm271_vm2, %v266_v15, %v268_v16 }
  0x8f   : > { %551 = vmatprep.subr.bf16.mxu0 %v273_v17 }
  0x90   : > { %v264_v18 = vpop.permute.xlu0 %263 }
  0x91   : > { %v270_v19 = vpop.permute.xlu1 %269  ;;  %v272_v20 = vsel %vm271_vm2, %v264_v18, %v266_v15 }
  0x92   : > { %552 = vmatpush1.bf16.msra.mxu0 %v272_v20  ;;  %v274_v21 = vsel %vm271_vm2, %v268_v16, %v270_v19 }
  0x93   : > { %593 = vmatpush1.bf16.msra.mxu1 %v274_v21 }
  0x94   : > { %v304_v22 = vpop.permute.xlu0 %303  ;;  %594 = vmatprep.subr.bf16.mxu1 %v841_v0 }
  0x95   : > { %v306_v23 = vpop.permute.xlu1 %305 }
  0x96   : > { %v311_v24 = vsel %vm309_vm3, %v304_v22, %v306_v23 }
  0x97   : > { %553 = vmatprep.subr.bf16.mxu0 %v311_v24 }
  0x98   : > { %v302_v25 = vpop.permute.xlu0 %301 }
  0x99   : > { %v308_v26 = vpop.permute.xlu1 %307  ;;  %v310_v27 = vsel %vm309_vm3, %v302_v25, %v304_v22 }
  0x9a   : > { %554 = vmatpush1.bf16.msra.mxu0 %v310_v27  ;;  %v312_v28 = vsel %vm309_vm3, %v306_v23, %v308_v26 }
  0x9b   : > { %595 = vmatpush1.bf16.msra.mxu1 %v312_v28 }
  0x9c   : > { %v342_v29 = vpop.permute.xlu0 %341  ;;  %596 = vmatprep.subr.bf16.mxu1 %v841_v0 }
  0x9d   : > { %v344_v30 = vpop.permute.xlu1 %343 }
  0x9e   : > { %v349_v31 = vsel %vm347_vm4, %v342_v29, %v344_v30 }
  0x9f   : > { %555 = vmatprep.subr.bf16.mxu0 %v349_v31 }
  0xa0   : > { %v340_v32 = vpop.permute.xlu0 %339 }
  0xa1   : > { %v346_v33 = vpop.permute.xlu1 %345  ;;  %v348_v34 = vsel %vm347_vm4, %v340_v32, %v342_v29 }
  0xa2   : > { %556 = vmatpush1.bf16.msra.mxu0 %v348_v34  ;;  %v350_v35 = vsel %vm347_vm4, %v344_v30, %v346_v33 }
  0xa3   : > { %597 = vmatpush1.bf16.msra.mxu1 %v350_v35 }
  0xa4   : > { %v380_v36 = vpop.permute.xlu0 %379  ;;  %598 = vmatprep.subr.bf16.mxu1 %v841_v0 }
  0xa5   : > { %v382_v37 = vpop.permute.xlu1 %381 }
  0xa6   : > { %v387_v38 = vsel %vm385_vm5, %v380_v36, %v382_v37 }
  0xa7   : > { %557 = vmatprep.subr.bf16.mxu0 %v387_v38 }
  0xa8   : > { %v378_v39 = vpop.permute.xlu0 %377 }
  0xa9   : > { %v384_v40 = vpop.permute.xlu1 %383  ;;  %v386_v41 = vsel %vm385_vm5, %v378_v39, %v380_v36 }
  0xaa   : > { %558 = vmatpush1.bf16.msra.mxu0 %v386_v41  ;;  %v388_v42 = vsel %vm385_vm5, %v382_v37, %v384_v40 }
  0xab   : > { %599 = vmatpush1.bf16.msra.mxu1 %v388_v42 }
  0xac   : > { %v418_v43 = vpop.permute.xlu0 %417  ;;  %600 = vmatprep.subr.bf16.mxu1 %v841_v0 }
  0xad   : > { %v420_v44 = vpop.permute.xlu1 %419 }
  0xae   : > { %v425_v45 = vsel %vm423_vm6, %v418_v43, %v420_v44 }
  0xaf   : > { %559 = vmatprep.subr.bf16.mxu0 %v425_v45 }
  0xb0   : > { %v416_v46 = vpop.permute.xlu0 %415 }
  0xb1   : > { %v422_v47 = vpop.permute.xlu1 %421  ;;  %v424_v48 = vsel %vm423_vm6, %v416_v46, %v418_v43 }
  0xb2   : > { %560 = vmatpush1.bf16.msra.mxu0 %v424_v48  ;;  %v426_v49 = vsel %vm423_vm6, %v420_v44, %v422_v47 }
  0xb3   : > { %601 = vmatpush1.bf16.msra.mxu1 %v426_v49 }
  0xb4   : > { %v456_v50 = vpop.permute.xlu0 %455  ;;  %602 = vmatprep.subr.bf16.mxu1 %v841_v0 }
  0xb5   : > { %v458_v51 = vpop.permute.xlu1 %457 }
  0xb6   : > { %v463_v52 = vsel %vm461_vm7, %v456_v50, %v458_v51 }
  0xb7   : > { %561 = vmatprep.subr.bf16.mxu0 %v463_v52 }
  0xb8   : > { %v454_v53 = vpop.permute.xlu0 %453 }
  0xb9   : > { %v460_v54 = vpop.permute.xlu1 %459  ;;  %v462_v55 = vsel %vm461_vm7, %v454_v53, %v456_v50 }
  0xba   : > { %562 = vmatpush1.bf16.msra.mxu0 %v462_v55  ;;  %v464_v56 = vsel %vm461_vm7, %v458_v51, %v460_v54 }
  0xbb   : > { %603 = vmatpush1.bf16.msra.mxu1 %v464_v56 }
  0xbc   : > { %v494_v57 = vpop.permute.xlu0 %493  ;;  %604 = vmatprep.subr.bf16.mxu1 %v841_v0 }
  0xbd   : > { %v496_v58 = vpop.permute.xlu1 %495 }
  0xbe   : > { %v501_v59 = vsel %vm499_vm8, %v494_v57, %v496_v58 }
  0xbf   : > { %563 = vmatprep.subr.bf16.mxu0 %v501_v59 }
  0xc0   : > { %v492_v60 = vpop.permute.xlu0 %491 }
  0xc1   : > { %v498_v61 = vpop.permute.xlu1 %497  ;;  %v500_v62 = vsel %vm499_vm8, %v492_v60, %v494_v57 }
  0xc2   : > { %564 = vmatpush1.bf16.msra.mxu0 %v500_v62  ;;  %v502_v1 = vsel %vm499_vm8, %v496_v58, %v498_v61 }
  0xc3   : > { %605 = vmatpush1.bf16.msra.mxu1 %v502_v1 }
  0xc5   : > { %580 = vmatmul.mubr.bf16.vlgmr.msra.gmra.mrb[0].mxu0 %v767_v63 }
  0xc6   : > { %621 = vmatmul.mubr.bf16.vlgmr.msra.gmra.mrb[0].mxu1 %v767_v63 }
 0x198   : > { %v581_v0 = vpop.f32.mrb[0].mxu0 }
 0x199   : > { %v628_v2 = vmax.f32 %v581_v0, 0.0  ;;  %v622_v3 = vpop.f32.mrb[0].mxu1  ;;  %v583_v4 = vpop.f32.mrb[1].mxu0 }
 0x19a   : > { %v630_v5 = vmax.f32 %v622_v3, 0.0  ;;  %v629_v7 = vmax.f32 %v583_v4, 0.0  ;;  %v624_v8 = vpop.f32.mrb[1].mxu1  ;;  %v585_v9 = vpop.f32.mrb[2].mxu0 }
 0x19b   : > { %631 = vst [vmem:[%s179_s30] sm:$0xff] %v628_v2  ;;  %v625_v6 = vpop.f32.mrb[2].mxu1  ;;  %v586_v10 = vpop.f32.mrb[3].mxu0 }
 0x19c   : > { %633 = vst [vmem:[%s179_s30 + $0x10] sm:$0xff] %v630_v5  ;;  %632 = vst [vmem:[%s179_s30 + $0x8] sm:$0xff] %v629_v7  ;;  %v626_v11 = vpop.f32.mrb[3].mxu1 }
 0x19d PF: > { %s12_s11 = sadd.s32 1, %s839_s11   ;;  %s923_s9 = smov %s835_s10 }
 0x19e   : > { %p9_p5 = scmp.ge.s32.totalorder %s12_s11, 4   ;;  %s924_s10 = smov %s926_s12 }
 0x1a0   :  { %11 = sbr.rel (!%p9_p5) target bundleno = 2 (0x2), region = 58 }

</bundles_post_ra>
